<compile_context>
chip_gen: v5e
topology: v5e:2x2
jax: 0.10.0
libtpu: 0.0.40
codegen_flags: <defaults>
</compile_context>

<pallas_src>
import jax
import jax.numpy as jnp
from jax.experimental import pallas as pl
from jax.experimental.pallas import tpu as pltpu

# ----- hyperparameters (match the PyTorch module globals) -----
d_model = 32
d_k = 16
d_v = 16
n_heads = 4

LN_EPS = 1e-5
MASK_FILL = -1000000000.0  # exact constant used by masked_fill_ in the reference


def mha_kernel(q_in_ref, k_in_ref, v_in_ref, mask_ref,
               wq_ref, wk_ref, wv_ref, wfc_ref, gamma_ref, beta_ref,
               out_ref, attn_ref):
    """One batch *chunk* (BB batch elements) per grid step.

    q/k/v_in_ref : (BB, S, d_model)                VMEM
    mask_ref     : (BB, S, S) int32 (nonzero == masked)
    wq/wk/wv_ref : (d_model, n_heads*d_{k,v})      pre-transposed on the host
    wfc_ref      : (n_heads*d_v, d_model)          pre-transposed on the host
    gamma/beta   : (1, d_model)
    out_ref      : (BB, S, d_model)
    attn_ref     : (BB, n_heads, S, S)
    """
    BB, S, _ = q_in_ref.shape

    xq = q_in_ref[...]                              # (BB, S, d_model) residual
    xq2 = xq.reshape(BB * S, d_model)
    xk2 = k_in_ref[...].reshape(BB * S, d_model)
    xv2 = v_in_ref[...].reshape(BB * S, d_model)

    # Linear projections on the full batch slab: y = x @ W_t  (MXU matmuls).
    # NOTE: a single fused [Wq|Wk|Wv] matmul is only valid when Q/K/V inputs are
    # the identical tensor (self-attention); kept separate here for generality.
    Q = jnp.dot(xq2, wq_ref[...], preferred_element_type=jnp.float32)   # (BB*S, H*d_k)
    K = jnp.dot(xk2, wk_ref[...], preferred_element_type=jnp.float32)   # (BB*S, H*d_k)
    V = jnp.dot(xv2, wv_ref[...], preferred_element_type=jnp.float32)   # (BB*S, H*d_v)
    Q = Q.reshape(BB, S, n_heads * d_k)
    K = K.reshape(BB, S, n_heads * d_k)
    V = V.reshape(BB, S, n_heads * d_v)

    scale = jnp.float32(1.0) / jnp.sqrt(jnp.float32(d_k))
    mask = mask_ref[...] != 0                       # (BB, S, S) bool, computed once

    # Per-head scores as batched 3-D einsums (batch dim = BB), stacked so the
    # mask/softmax/store happen once on the full (BB, H, S, S) tensor.
    scores_list = []
    for h in range(n_heads):                        # static unrolled loop
        Qh = Q[:, :, h * d_k:(h + 1) * d_k]         # (BB, S, d_k)
        Kh = K[:, :, h * d_k:(h + 1) * d_k]         # (BB, S, d_k)
        scores_list.append(
            jnp.einsum('bqd,bkd->bqk', Qh, Kh, preferred_element_type=jnp.float32))
    scores = jnp.stack(scores_list, axis=1) * scale                 # (BB, H, S, S)
    scores = jnp.where(mask[:, None, :, :], jnp.float32(MASK_FILL), scores)

    # numerically stable softmax along the key dim, for all heads at once
    m = jnp.max(scores, axis=-1, keepdims=True)
    e = jnp.exp(scores - m)
    denom = jnp.sum(e, axis=-1, keepdims=True)
    # NOTE: exact division kept (instead of pl.reciprocal(approx=True)) so the
    # returned attn matches the reference softmax to 1e-5; the divide is tiny here.
    attn = e / denom                                                # (BB, H, S, S)

    attn_ref[...] = attn                            # ONE coalesced store for all heads

    # context = attn @ V per head, batched over BB, then concatenated over heads.
    ctx_list = []
    for h in range(n_heads):                        # static unrolled loop
        Vh = V[:, :, h * d_v:(h + 1) * d_v]         # (BB, S, d_v)
        ctx_list.append(
            jnp.einsum('bqk,bkd->bqd', attn[:, h], Vh, preferred_element_type=jnp.float32))
    context = jnp.concatenate(ctx_list, axis=-1).reshape(BB * S, n_heads * d_v)

    output = jnp.dot(context, wfc_ref[...], preferred_element_type=jnp.float32)  # (BB*S, d_model)

    # residual + LayerNorm over the feature (last) dimension
    y = output + xq2
    mean = jnp.mean(y, axis=-1, keepdims=True)
    var = jnp.mean((y - mean) ** 2, axis=-1, keepdims=True)
    y_norm = (y - mean) * jax.lax.rsqrt(var + jnp.float32(LN_EPS))
    out2 = y_norm * gamma_ref[...] + beta_ref[...]

    out_ref[...] = out2.reshape(BB, S, d_model)     # single lane-dense output store


def multi_head_attention(input_Q, input_K, input_V, attn_mask, params, *, num_programs=1):
    """Pallas wrapper. Returns (layernorm(fc(context)+residual), attn).

    num_programs: how many grid programs to split the batch across.  Use 1 for
    v5e/v6e (single TensorCore); 2 on v7x so both TensorCores get work.
    """
    B, S, _ = input_Q.shape

    # pick a grid size that divides the batch
    G = max(1, min(num_programs, B))
    while B % G:
        G -= 1
    BB = B // G

    # Pre-transpose constant weights once on the host so the kernel does x @ W.
    wq_t = params["wq"].T            # (d_model, n_heads*d_k)
    wk_t = params["wk"].T            # (d_model, n_heads*d_k)
    wv_t = params["wv"].T            # (d_model, n_heads*d_v)
    wfc_t = params["wfc"].T          # (n_heads*d_v, d_model)
    gamma, beta = params["gamma"], params["beta"]

    mask_i32 = attn_mask.astype(jnp.int32)

    act_spec = pl.BlockSpec((BB, S, d_model), lambda g: (g, 0, 0))
    mask_spec = pl.BlockSpec((BB, S, S), lambda g: (g, 0, 0))
    wqk_spec = pl.BlockSpec((d_model, n_heads * d_k), lambda g: (0, 0))
    wv_spec = pl.BlockSpec((d_model, n_heads * d_v), lambda g: (0, 0))
    wfc_spec = pl.BlockSpec((n_heads * d_v, d_model), lambda g: (0, 0))
    vec_spec = pl.BlockSpec((1, d_model), lambda g: (0, 0))

    out, attn = pl.pallas_call(
        mha_kernel,
        grid=(G,),
        in_specs=[act_spec, act_spec, act_spec, mask_spec,
                  wqk_spec, wqk_spec, wv_spec, wfc_spec,
                  vec_spec, vec_spec],
        out_specs=[
            pl.BlockSpec((BB, S, d_model), lambda g: (g, 0, 0)),
            pl.BlockSpec((BB, n_heads, S, S), lambda g: (g, 0, 0, 0)),
        ],
        out_shape=(
            jax.ShapeDtypeStruct((B, S, d_model), jnp.float32),
            jax.ShapeDtypeStruct((B, n_heads, S, S), jnp.float32),
        ),
        compiler_params=pltpu.CompilerParams(
            dimension_semantics=("parallel",)),
    )(input_Q, input_K, input_V, mask_i32, wq_t, wk_t, wv_t, wfc_t, gamma, beta)
    return out, attn


def reference_forward(input_Q, input_K, input_V, attn_mask, params):
    """Pure-JAX reference mirroring the PyTorch module (for verification)."""
    B, S, _ = input_Q.shape
    wq, wk, wv, wfc, gamma, beta = (params["wq"], params["wk"], params["wv"],
                                    params["wfc"], params["gamma"], params["beta"])
    Q = (input_Q @ wq.T).reshape(B, S, n_heads, d_k).transpose(0, 2, 1, 3)
    K = (input_K @ wk.T).reshape(B, S, n_heads, d_k).transpose(0, 2, 1, 3)
    V = (input_V @ wv.T).reshape(B, S, n_heads, d_v).transpose(0, 2, 1, 3)
    mask = attn_mask[:, None, :, :].astype(bool)
    scores = jnp.einsum("bhqd,bhkd->bhqk", Q, K) / jnp.sqrt(jnp.float32(d_k))
    scores = jnp.where(mask, jnp.float32(MASK_FILL), scores)
    attn = jax.nn.softmax(scores, axis=-1)
    ctx = jnp.einsum("bhqk,bhkd->bhqd", attn, V)
    ctx = ctx.transpose(0, 2, 1, 3).reshape(B, S, n_heads * d_v)
    out = ctx @ wfc.T + input_Q
    mean = jnp.mean(out, axis=-1, keepdims=True)
    var = jnp.mean((out - mean) ** 2, axis=-1, keepdims=True)
    out = (out - mean) / jnp.sqrt(var + LN_EPS) * gamma[0] + beta[0]
    return out, attn


if __name__ == "__main__":
    B, S = 2, 8
    key = jax.random.PRNGKey(0)
    k_q, k_k, k_v, k_wq, k_wk, k_wv, k_fc = jax.random.split(key, 7)

    input_Q = jax.random.normal(k_q, (B, S, d_model), dtype=jnp.float32)
    input_K = jax.random.normal(k_k, (B, S, d_model), dtype=jnp.float32)
    input_V = jax.random.normal(k_v, (B, S, d_model), dtype=jnp.float32)

    # deterministic padding-style mask: last 2 key positions are masked out
    key_padded = jnp.arange(S) >= (S - 2)                     # (S,)
    attn_mask = jnp.broadcast_to(key_padded[None, None, :], (B, S, S))

    scale = 0.05
    params = {
        "wq": scale * jax.random.normal(k_wq, (n_heads * d_k, d_model), jnp.float32),
        "wk": scale * jax.random.normal(k_wk, (n_heads * d_k, d_model), jnp.float32),
        "wv": scale * jax.random.normal(k_wv, (n_heads * d_v, d_model), jnp.float32),
        "wfc": scale * jax.random.normal(k_fc, (d_model, n_heads * d_v), jnp.float32),
        "gamma": jnp.ones((1, d_model), jnp.float32),   # nn.LayerNorm default weight
        "beta": jnp.zeros((1, d_model), jnp.float32),   # nn.LayerNorm default bias
    }

    # num_programs=1 folds the whole batch into a single program (v5e/v6e);
    # pass num_programs=2 on v7x to use both TensorCores.
    out, attn = multi_head_attention(input_Q, input_K, input_V, attn_mask, params,
                                     num_programs=1)
    out = jax.block_until_ready(out)
    attn = jax.block_until_ready(attn)

    ref_out, ref_attn = reference_forward(input_Q, input_K, input_V, attn_mask, params)
    assert out.shape == (B, S, d_model) and attn.shape == (B, n_heads, S, S)
    assert jnp.allclose(out, ref_out, atol=1e-4, rtol=1e-4)
    assert jnp.allclose(attn, ref_attn, atol=1e-5, rtol=1e-5)

    print("KERNEL_OK")
</pallas_src>

<mosaic_0001>
module attributes {stable_mosaic.version = 11 : i64} {
  func.func @mha_kernel(%arg0: i32, %arg1: memref<2x8x32xf32, #tpu.memory_space<vmem>>, %arg2: memref<2x8x32xf32, #tpu.memory_space<vmem>>, %arg3: memref<2x8x32xf32, #tpu.memory_space<vmem>>, %arg4: memref<2x8x8xi32, #tpu.memory_space<vmem>>, %arg5: memref<32x64xf32, #tpu.memory_space<vmem>>, %arg6: memref<32x64xf32, #tpu.memory_space<vmem>>, %arg7: memref<32x64xf32, #tpu.memory_space<vmem>>, %arg8: memref<64x32xf32, #tpu.memory_space<vmem>>, %arg9: memref<1x32xf32, #tpu.memory_space<vmem>>, %arg10: memref<1x32xf32, #tpu.memory_space<vmem>>, %arg11: memref<2x8x32xf32, #tpu.memory_space<vmem>>, %arg12: memref<2x4x8x8xf32, #tpu.memory_space<vmem>>) attributes {dimension_semantics = [#tpu.dimension_semantics<parallel>], iteration_bounds = array<i64: 1>, scalar_prefetch = 0 : i64, scratch_operands = 0 : i64, tpu.core_type = #tpu.core_type<tc>, window_params = [{transform_indices = @transform_0, window_bounds = array<i64: 2, 8, 32>}, {transform_indices = @transform_1, window_bounds = array<i64: 2, 8, 32>}, {transform_indices = @transform_2, window_bounds = array<i64: 2, 8, 32>}, {transform_indices = @transform_3, window_bounds = array<i64: 2, 8, 8>}, {pipeline_mode = #tpu.pipeline_mode<synchronous>, transform_indices = @transform_4, window_bounds = array<i64: 32, 64>}, {pipeline_mode = #tpu.pipeline_mode<synchronous>, transform_indices = @transform_5, window_bounds = array<i64: 32, 64>}, {pipeline_mode = #tpu.pipeline_mode<synchronous>, transform_indices = @transform_6, window_bounds = array<i64: 32, 64>}, {pipeline_mode = #tpu.pipeline_mode<synchronous>, transform_indices = @transform_7, window_bounds = array<i64: 64, 32>}, {pipeline_mode = #tpu.pipeline_mode<synchronous>, transform_indices = @transform_8, window_bounds = array<i64: 1, 32>}, {pipeline_mode = #tpu.pipeline_mode<synchronous>, transform_indices = @transform_9, window_bounds = array<i64: 1, 32>}, {transform_indices = @transform_10, window_bounds = array<i64: 2, 8, 32>}, {transform_indices = @transform_11, window_bounds = array<i64: 2, 4, 8, 8>}]} {
    %c0 = arith.constant 0 : index
    %c0_0 = arith.constant 0 : index
    %c0_1 = arith.constant 0 : index
    %0 = vector.load %arg1[%c0, %c0_0, %c0_1] : memref<2x8x32xf32, #tpu.memory_space<vmem>>, vector<2x8x32xf32>
    %1 = vector.shape_cast %0 : vector<2x8x32xf32> to vector<16x32xf32>
    %c0_2 = arith.constant 0 : index
    %c0_3 = arith.constant 0 : index
    %c0_4 = arith.constant 0 : index
    %2 = vector.load %arg2[%c0_2, %c0_3, %c0_4] : memref<2x8x32xf32, #tpu.memory_space<vmem>>, vector<2x8x32xf32>
    %3 = vector.shape_cast %2 : vector<2x8x32xf32> to vector<16x32xf32>
    %c0_5 = arith.constant 0 : index
    %c0_6 = arith.constant 0 : index
    %c0_7 = arith.constant 0 : index
    %4 = vector.load %arg3[%c0_5, %c0_6, %c0_7] : memref<2x8x32xf32, #tpu.memory_space<vmem>>, vector<2x8x32xf32>
    %5 = vector.shape_cast %4 : vector<2x8x32xf32> to vector<16x32xf32>
    %c0_8 = arith.constant 0 : index
    %c0_9 = arith.constant 0 : index
    %6 = vector.load %arg5[%c0_8, %c0_9] : memref<32x64xf32, #tpu.memory_space<vmem>>, vector<32x64xf32>
    %cst = arith.constant dense<0.000000e+00> : vector<16x64xf32>
    %7 = tpu.matmul %1, %6, %cst {dimension_numbers = #tpu.dot_dimension_numbers<[1], [0], [0], [1], [0, 0, 1, 1], [], []>} : vector<16x32xf32>, vector<32x64xf32>, vector<16x64xf32> -> vector<16x64xf32>
    %c0_10 = arith.constant 0 : index
    %c0_11 = arith.constant 0 : index
    %8 = vector.load %arg6[%c0_10, %c0_11] : memref<32x64xf32, #tpu.memory_space<vmem>>, vector<32x64xf32>
    %cst_12 = arith.constant dense<0.000000e+00> : vector<16x64xf32>
    %9 = tpu.matmul %3, %8, %cst_12 {dimension_numbers = #tpu.dot_dimension_numbers<[1], [0], [0], [1], [0, 0, 1, 1], [], []>} : vector<16x32xf32>, vector<32x64xf32>, vector<16x64xf32> -> vector<16x64xf32>
    %c0_13 = arith.constant 0 : index
    %c0_14 = arith.constant 0 : index
    %10 = vector.load %arg7[%c0_13, %c0_14] : memref<32x64xf32, #tpu.memory_space<vmem>>, vector<32x64xf32>
    %cst_15 = arith.constant dense<0.000000e+00> : vector<16x64xf32>
    %11 = tpu.matmul %5, %10, %cst_15 {dimension_numbers = #tpu.dot_dimension_numbers<[1], [0], [0], [1], [0, 0, 1, 1], [], []>} : vector<16x32xf32>, vector<32x64xf32>, vector<16x64xf32> -> vector<16x64xf32>
    %12 = vector.shape_cast %7 : vector<16x64xf32> to vector<2x8x64xf32>
    %13 = vector.shape_cast %9 : vector<16x64xf32> to vector<2x8x64xf32>
    %14 = vector.shape_cast %11 : vector<16x64xf32> to vector<2x8x64xf32>
    %cst_16 = arith.constant 1.600000e+01 : f32
    %15 = math.sqrt %cst_16 : f32
    %cst_17 = arith.constant 1.000000e+00 : f32
    %16 = arith.divf %cst_17, %15 : f32
    %c0_18 = arith.constant 0 : index
    %c0_19 = arith.constant 0 : index
    %c0_20 = arith.constant 0 : index
    %17 = vector.load %arg4[%c0_18, %c0_19, %c0_20] : memref<2x8x8xi32, #tpu.memory_space<vmem>>, vector<2x8x8xi32>
    %c0_i32 = arith.constant 0 : i32
    %18 = vector.broadcast %c0_i32 : i32 to vector<2x8x8xi32>
    %19 = arith.cmpi ne, %17, %18 : vector<2x8x8xi32>
    %20 = vector.extract_strided_slice %12 {offsets = [0, 0, 0], sizes = [2, 8, 16], strides = [1, 1, 1]} : vector<2x8x64xf32> to vector<2x8x16xf32>
    %21 = vector.extract_strided_slice %13 {offsets = [0, 0, 0], sizes = [2, 8, 16], strides = [1, 1, 1]} : vector<2x8x64xf32> to vector<2x8x16xf32>
    "tpu.trace_start"() <{level = 10 : i32, message = "bqd,bkd->bqk"}> : () -> ()
    %cst_21 = arith.constant dense<0.000000e+00> : vector<2x8x8xf32>
    %22 = tpu.matmul %20, %21, %cst_21 {dimension_numbers = #tpu.dot_dimension_numbers<[2], [2], [1], [1], [0, 0, 0, 1, 1, 1], [0], [0]>} : vector<2x8x16xf32>, vector<2x8x16xf32>, vector<2x8x8xf32> -> vector<2x8x8xf32>
    "tpu.trace_stop"() : () -> ()
    %23 = vector.extract_strided_slice %12 {offsets = [0, 0, 16], sizes = [2, 8, 16], strides = [1, 1, 1]} : vector<2x8x64xf32> to vector<2x8x16xf32>
    %24 = vector.extract_strided_slice %13 {offsets = [0, 0, 16], sizes = [2, 8, 16], strides = [1, 1, 1]} : vector<2x8x64xf32> to vector<2x8x16xf32>
    "tpu.trace_start"() <{level = 10 : i32, message = "bqd,bkd->bqk"}> : () -> ()
    %cst_22 = arith.constant dense<0.000000e+00> : vector<2x8x8xf32>
    %25 = tpu.matmul %23, %24, %cst_22 {dimension_numbers = #tpu.dot_dimension_numbers<[2], [2], [1], [1], [0, 0, 0, 1, 1, 1], [0], [0]>} : vector<2x8x16xf32>, vector<2x8x16xf32>, vector<2x8x8xf32> -> vector<2x8x8xf32>
    "tpu.trace_stop"() : () -> ()
    %26 = vector.extract_strided_slice %12 {offsets = [0, 0, 32], sizes = [2, 8, 16], strides = [1, 1, 1]} : vector<2x8x64xf32> to vector<2x8x16xf32>
    %27 = vector.extract_strided_slice %13 {offsets = [0, 0, 32], sizes = [2, 8, 16], strides = [1, 1, 1]} : vector<2x8x64xf32> to vector<2x8x16xf32>
    "tpu.trace_start"() <{level = 10 : i32, message = "bqd,bkd->bqk"}> : () -> ()
    %cst_23 = arith.constant dense<0.000000e+00> : vector<2x8x8xf32>
    %28 = tpu.matmul %26, %27, %cst_23 {dimension_numbers = #tpu.dot_dimension_numbers<[2], [2], [1], [1], [0, 0, 0, 1, 1, 1], [0], [0]>} : vector<2x8x16xf32>, vector<2x8x16xf32>, vector<2x8x8xf32> -> vector<2x8x8xf32>
    "tpu.trace_stop"() : () -> ()
    %29 = vector.extract_strided_slice %12 {offsets = [0, 0, 48], sizes = [2, 8, 16], strides = [1, 1, 1]} : vector<2x8x64xf32> to vector<2x8x16xf32>
    %30 = vector.extract_strided_slice %13 {offsets = [0, 0, 48], sizes = [2, 8, 16], strides = [1, 1, 1]} : vector<2x8x64xf32> to vector<2x8x16xf32>
    "tpu.trace_start"() <{level = 10 : i32, message = "bqd,bkd->bqk"}> : () -> ()
    %cst_24 = arith.constant dense<0.000000e+00> : vector<2x8x8xf32>
    %31 = tpu.matmul %29, %30, %cst_24 {dimension_numbers = #tpu.dot_dimension_numbers<[2], [2], [1], [1], [0, 0, 0, 1, 1, 1], [0], [0]>} : vector<2x8x16xf32>, vector<2x8x16xf32>, vector<2x8x8xf32> -> vector<2x8x8xf32>
    "tpu.trace_stop"() : () -> ()
    %32 = vector.shape_cast %22 : vector<2x8x8xf32> to vector<2x1x8x8xf32>
    %33 = vector.shape_cast %25 : vector<2x8x8xf32> to vector<2x1x8x8xf32>
    %34 = vector.shape_cast %28 : vector<2x8x8xf32> to vector<2x1x8x8xf32>
    %35 = vector.shape_cast %31 : vector<2x8x8xf32> to vector<2x1x8x8xf32>
    %36 = tpu.concatenate %32, %33, %34, %35 in 1 : vector<2x1x8x8xf32>, vector<2x1x8x8xf32>, vector<2x1x8x8xf32>, vector<2x1x8x8xf32> -> vector<2x4x8x8xf32>
    %37 = vector.broadcast %16 : f32 to vector<2x4x8x8xf32>
    %38 = arith.mulf %36, %37 : vector<2x4x8x8xf32>
    %39 = vector.shape_cast %19 : vector<2x8x8xi1> to vector<2x1x8x8xi1>
    %cst_25 = arith.constant -1.000000e+09 : f32
    %40 = vector.shape_cast %39 : vector<2x1x8x8xi1> to vector<2x1x8x8xi1>
    %41 = vector.broadcast %40 : vector<2x1x8x8xi1> to vector<2x4x8x8xi1>
    %42 = vector.broadcast %cst_25 : f32 to vector<2x4x8x8xf32>
    %43 = arith.select %41, %42, %38 : vector<2x4x8x8xi1>, vector<2x4x8x8xf32>
    %cst_26 = arith.constant dense<0xFF800000> : vector<2x4x8xf32>
    %44 = vector.multi_reduction <maximumf>, %43, %cst_26 [3] : vector<2x4x8x8xf32> to vector<2x4x8xf32>
    %45 = vector.shape_cast %44 : vector<2x4x8xf32> to vector<2x4x8x1xf32>
    %46 = vector.broadcast %45 : vector<2x4x8x1xf32> to vector<2x4x8x8xf32>
    %47 = arith.subf %43, %46 : vector<2x4x8x8xf32>
    %48 = math.exp %47 : vector<2x4x8x8xf32>
    %cst_27 = arith.constant dense<0.000000e+00> : vector<2x4x8xf32>
    %49 = vector.multi_reduction <add>, %48, %cst_27 [3] : vector<2x4x8x8xf32> to vector<2x4x8xf32>
    %50 = vector.shape_cast %49 : vector<2x4x8xf32> to vector<2x4x8x1xf32>
    %51 = vector.broadcast %50 : vector<2x4x8x1xf32> to vector<2x4x8x8xf32>
    %52 = arith.divf %48, %51 : vector<2x4x8x8xf32>
    %c0_28 = arith.constant 0 : index
    %c0_29 = arith.constant 0 : index
    %c0_30 = arith.constant 0 : index
    %c0_31 = arith.constant 0 : index
    %53 = vector.load %arg12[%c0_28, %c0_29, %c0_30, %c0_31] : memref<2x4x8x8xf32, #tpu.memory_space<vmem>>, vector<2x4x8x8xf32>
    tpu.vector_store %arg12[%c0_28, %c0_29, %c0_30, %c0_31], %52 {strides = array<i32>} : memref<2x4x8x8xf32, #tpu.memory_space<vmem>>, vector<2x4x8x8xf32>,
    %54 = vector.extract_strided_slice %14 {offsets = [0, 0, 0], sizes = [2, 8, 16], strides = [1, 1, 1]} : vector<2x8x64xf32> to vector<2x8x16xf32>
    %55 = vector.extract_strided_slice %52 {offsets = [0, 0, 0, 0], sizes = [2, 1, 8, 8], strides = [1, 1, 1, 1]} : vector<2x4x8x8xf32> to vector<2x1x8x8xf32>
    %56 = vector.shape_cast %55 : vector<2x1x8x8xf32> to vector<2x8x8xf32>
    "tpu.trace_start"() <{level = 10 : i32, message = "bqk,bkd->bqd"}> : () -> ()
    %cst_32 = arith.constant dense<0.000000e+00> : vector<2x8x16xf32>
    %57 = tpu.matmul %56, %54, %cst_32 {dimension_numbers = #tpu.dot_dimension_numbers<[2], [1], [1], [2], [0, 0, 0, 1, 1, 2], [0], [0]>} : vector<2x8x8xf32>, vector<2x8x16xf32>, vector<2x8x16xf32> -> vector<2x8x16xf32>
    "tpu.trace_stop"() : () -> ()
    %58 = vector.extract_strided_slice %14 {offsets = [0, 0, 16], sizes = [2, 8, 16], strides = [1, 1, 1]} : vector<2x8x64xf32> to vector<2x8x16xf32>
    %59 = vector.extract_strided_slice %52 {offsets = [0, 1, 0, 0], sizes = [2, 1, 8, 8], strides = [1, 1, 1, 1]} : vector<2x4x8x8xf32> to vector<2x1x8x8xf32>
    %60 = vector.shape_cast %59 : vector<2x1x8x8xf32> to vector<2x8x8xf32>
    "tpu.trace_start"() <{level = 10 : i32, message = "bqk,bkd->bqd"}> : () -> ()
    %cst_33 = arith.constant dense<0.000000e+00> : vector<2x8x16xf32>
    %61 = tpu.matmul %60, %58, %cst_33 {dimension_numbers = #tpu.dot_dimension_numbers<[2], [1], [1], [2], [0, 0, 0, 1, 1, 2], [0], [0]>} : vector<2x8x8xf32>, vector<2x8x16xf32>, vector<2x8x16xf32> -> vector<2x8x16xf32>
    "tpu.trace_stop"() : () -> ()
    %62 = vector.extract_strided_slice %14 {offsets = [0, 0, 32], sizes = [2, 8, 16], strides = [1, 1, 1]} : vector<2x8x64xf32> to vector<2x8x16xf32>
    %63 = vector.extract_strided_slice %52 {offsets = [0, 2, 0, 0], sizes = [2, 1, 8, 8], strides = [1, 1, 1, 1]} : vector<2x4x8x8xf32> to vector<2x1x8x8xf32>
    %64 = vector.shape_cast %63 : vector<2x1x8x8xf32> to vector<2x8x8xf32>
    "tpu.trace_start"() <{level = 10 : i32, message = "bqk,bkd->bqd"}> : () -> ()
    %cst_34 = arith.constant dense<0.000000e+00> : vector<2x8x16xf32>
    %65 = tpu.matmul %64, %62, %cst_34 {dimension_numbers = #tpu.dot_dimension_numbers<[2], [1], [1], [2], [0, 0, 0, 1, 1, 2], [0], [0]>} : vector<2x8x8xf32>, vector<2x8x16xf32>, vector<2x8x16xf32> -> vector<2x8x16xf32>
    "tpu.trace_stop"() : () -> ()
    %66 = vector.extract_strided_slice %14 {offsets = [0, 0, 48], sizes = [2, 8, 16], strides = [1, 1, 1]} : vector<2x8x64xf32> to vector<2x8x16xf32>
    %67 = vector.extract_strided_slice %52 {offsets = [0, 3, 0, 0], sizes = [2, 1, 8, 8], strides = [1, 1, 1, 1]} : vector<2x4x8x8xf32> to vector<2x1x8x8xf32>
    %68 = vector.shape_cast %67 : vector<2x1x8x8xf32> to vector<2x8x8xf32>
    "tpu.trace_start"() <{level = 10 : i32, message = "bqk,bkd->bqd"}> : () -> ()
    %cst_35 = arith.constant dense<0.000000e+00> : vector<2x8x16xf32>
    %69 = tpu.matmul %68, %66, %cst_35 {dimension_numbers = #tpu.dot_dimension_numbers<[2], [1], [1], [2], [0, 0, 0, 1, 1, 2], [0], [0]>} : vector<2x8x8xf32>, vector<2x8x16xf32>, vector<2x8x16xf32> -> vector<2x8x16xf32>
    "tpu.trace_stop"() : () -> ()
    %70 = tpu.concatenate %57, %61, %65, %69 in 2 : vector<2x8x16xf32>, vector<2x8x16xf32>, vector<2x8x16xf32>, vector<2x8x16xf32> -> vector<2x8x64xf32>
    %71 = vector.shape_cast %70 : vector<2x8x64xf32> to vector<16x64xf32>
    %c0_36 = arith.constant 0 : index
    %c0_37 = arith.constant 0 : index
    %72 = vector.load %arg8[%c0_36, %c0_37] : memref<64x32xf32, #tpu.memory_space<vmem>>, vector<64x32xf32>
    %cst_38 = arith.constant dense<0.000000e+00> : vector<16x32xf32>
    %73 = tpu.matmul %71, %72, %cst_38 {dimension_numbers = #tpu.dot_dimension_numbers<[1], [0], [0], [1], [0, 0, 1, 1], [], []>} : vector<16x64xf32>, vector<64x32xf32>, vector<16x32xf32> -> vector<16x32xf32>
    %74 = arith.addf %73, %1 : vector<16x32xf32>
    %cst_39 = arith.constant dense<0.000000e+00> : vector<16xf32>
    %75 = vector.multi_reduction <add>, %74, %cst_39 [1] : vector<16x32xf32> to vector<16xf32>
    %76 = vector.shape_cast %75 : vector<16xf32> to vector<16x1xf32>
    %cst_40 = arith.constant 3.200000e+01 : f32
    %77 = vector.broadcast %cst_40 : f32 to vector<16x1xf32>
    %78 = arith.divf %76, %77 : vector<16x1xf32>
    %79 = vector.broadcast %78 : vector<16x1xf32> to vector<16x32xf32>
    %80 = arith.subf %74, %79 : vector<16x32xf32>
    %81 = arith.mulf %80, %80 : vector<16x32xf32>
    %cst_41 = arith.constant dense<0.000000e+00> : vector<16xf32>
    %82 = vector.multi_reduction <add>, %81, %cst_41 [1] : vector<16x32xf32> to vector<16xf32>
    %83 = vector.shape_cast %82 : vector<16xf32> to vector<16x1xf32>
    %cst_42 = arith.constant 3.200000e+01 : f32
    %84 = vector.broadcast %cst_42 : f32 to vector<16x1xf32>
    %85 = arith.divf %83, %84 : vector<16x1xf32>
    %86 = vector.broadcast %78 : vector<16x1xf32> to vector<16x32xf32>
    %87 = arith.subf %74, %86 : vector<16x32xf32>
    %cst_43 = arith.constant 9.99999974E-6 : f32
    %88 = vector.broadcast %cst_43 : f32 to vector<16x1xf32>
    %89 = arith.addf %85, %88 : vector<16x1xf32>
    %90 = math.rsqrt %89 : vector<16x1xf32>
    %91 = vector.broadcast %90 : vector<16x1xf32> to vector<16x32xf32>
    %92 = arith.mulf %87, %91 : vector<16x32xf32>
    %c0_44 = arith.constant 0 : index
    %c0_45 = arith.constant 0 : index
    %93 = vector.load %arg9[%c0_44, %c0_45] : memref<1x32xf32, #tpu.memory_space<vmem>>, vector<1x32xf32>
    %94 = vector.broadcast %93 : vector<1x32xf32> to vector<16x32xf32>
    %95 = arith.mulf %92, %94 : vector<16x32xf32>
    %c0_46 = arith.constant 0 : index
    %c0_47 = arith.constant 0 : index
    %96 = vector.load %arg10[%c0_46, %c0_47] : memref<1x32xf32, #tpu.memory_space<vmem>>, vector<1x32xf32>
    %97 = vector.broadcast %96 : vector<1x32xf32> to vector<16x32xf32>
    %98 = arith.addf %95, %97 : vector<16x32xf32>
    %99 = vector.shape_cast %98 : vector<16x32xf32> to vector<2x8x32xf32>
    %c0_48 = arith.constant 0 : index
    %c0_49 = arith.constant 0 : index
    %c0_50 = arith.constant 0 : index
    %100 = vector.load %arg11[%c0_48, %c0_49, %c0_50] : memref<2x8x32xf32, #tpu.memory_space<vmem>>, vector<2x8x32xf32>
    tpu.vector_store %arg11[%c0_48, %c0_49, %c0_50], %99 {strides = array<i32>} : memref<2x8x32xf32, #tpu.memory_space<vmem>>, vector<2x8x32xf32>,
    return
  }
  func.func @transform_0(%arg0: i32) -> (i32, i32, i32) {
    %c0_i32 = arith.constant 0 : i32
    %c0_i32_0 = arith.constant 0 : i32
    %c0_i32_1 = arith.constant 0 : i32
    return %arg0, %c0_i32, %c0_i32_0 : i32, i32, i32
  }
  func.func @transform_1(%arg0: i32) -> (i32, i32, i32) {
    %c0_i32 = arith.constant 0 : i32
    %c0_i32_0 = arith.constant 0 : i32
    %c0_i32_1 = arith.constant 0 : i32
    return %arg0, %c0_i32, %c0_i32_0 : i32, i32, i32
  }
  func.func @transform_2(%arg0: i32) -> (i32, i32, i32) {
    %c0_i32 = arith.constant 0 : i32
    %c0_i32_0 = arith.constant 0 : i32
    %c0_i32_1 = arith.constant 0 : i32
    return %arg0, %c0_i32, %c0_i32_0 : i32, i32, i32
  }
  func.func @transform_3(%arg0: i32) -> (i32, i32, i32) {
    %c0_i32 = arith.constant 0 : i32
    %c0_i32_0 = arith.constant 0 : i32
    %c0_i32_1 = arith.constant 0 : i32
    return %arg0, %c0_i32, %c0_i32_0 : i32, i32, i32
  }
  func.func @transform_4(%arg0: i32) -> (i32, i32) {
    %c0_i32 = arith.constant 0 : i32
    %c0_i32_0 = arith.constant 0 : i32
    %c0_i32_1 = arith.constant 0 : i32
    return %c0_i32, %c0_i32_0 : i32, i32
  }
  func.func @transform_5(%arg0: i32) -> (i32, i32) {
    %c0_i32 = arith.constant 0 : i32
    %c0_i32_0 = arith.constant 0 : i32
    %c0_i32_1 = arith.constant 0 : i32
    return %c0_i32, %c0_i32_0 : i32, i32
  }
  func.func @transform_6(%arg0: i32) -> (i32, i32) {
    %c0_i32 = arith.constant 0 : i32
    %c0_i32_0 = arith.constant 0 : i32
    %c0_i32_1 = arith.constant 0 : i32
    return %c0_i32, %c0_i32_0 : i32, i32
  }
  func.func @transform_7(%arg0: i32) -> (i32, i32) {
    %c0_i32 = arith.constant 0 : i32
    %c0_i32_0 = arith.constant 0 : i32
    %c0_i32_1 = arith.constant 0 : i32
    return %c0_i32, %c0_i32_0 : i32, i32
  }
  func.func @transform_8(%arg0: i32) -> (i32, i32) {
    %c0_i32 = arith.constant 0 : i32
    %c0_i32_0 = arith.constant 0 : i32
    %c0_i32_1 = arith.constant 0 : i32
    return %c0_i32, %c0_i32_0 : i32, i32
  }
  func.func @transform_9(%arg0: i32) -> (i32, i32) {
    %c0_i32 = arith.constant 0 : i32
    %c0_i32_0 = arith.constant 0 : i32
    %c0_i32_1 = arith.constant 0 : i32
    return %c0_i32, %c0_i32_0 : i32, i32
  }
  func.func @transform_10(%arg0: i32) -> (i32, i32, i32) {
    %c0_i32 = arith.constant 0 : i32
    %c0_i32_0 = arith.constant 0 : i32
    %c0_i32_1 = arith.constant 0 : i32
    return %arg0, %c0_i32, %c0_i32_0 : i32, i32, i32
  }
  func.func @transform_11(%arg0: i32) -> (i32, i32, i32, i32) {
    %c0_i32 = arith.constant 0 : i32
    %c0_i32_0 = arith.constant 0 : i32
    %c0_i32_1 = arith.constant 0 : i32
    %c0_i32_2 = arith.constant 0 : i32
    return %arg0, %c0_i32, %c0_i32_0, %c0_i32_1 : i32, i32, i32, i32
  }
}

</mosaic_0001>

<bundles_post_ra>
// kernel: tpu_custom_call.1
= control target key start
LH: loop header
LB: loop body
LE: loop exit
PB: predicated region body
PF: predicated region fallthrough
CT: control target
= control target key end

     0   :  { %17 = vsyncpa [#allocation3], 0  ;;  %s1616_s0 = inlined_call_operand.hbm [shape: f32[2,8,32], index: 0, kind: input, shape index: {}]   ;;  %s1617_s1 = inlined_call_operand.hbm [shape: f32[2,8,32], index: 1, kind: input, shape index: {}]   ;;  %s1618_s2 = inlined_call_operand.hbm [shape: f32[2,8,32], index: 2, kind: input, shape index: {}]   ;;  %s1619_s3 = inlined_call_operand.hbm [shape: s32[2,8,8], index: 3, kind: input, shape index: {}]   ;;  %s1620_s4 = inlined_call_operand.vmem [shape: f32[32,64], index: 4, kind: input, shape index: {}]   ;;  %s1621_s5 = inlined_call_operand.vmem [shape: f32[32,64], index: 5, kind: input, shape index: {}]   ;;  %s1622_s6 = inlined_call_operand.vmem [shape: f32[32,64], index: 6, kind: input, shape index: {}]   ;;  %s1623_s7 = inlined_call_operand.vmem [shape: f32[64,32], index: 7, kind: input, shape index: {}]   ;;  %s1624_s8 = inlined_call_operand.vmem [shape: f32[1,32], index: 8, kind: input, shape index: {}]   ;;  %s1625_s9 = inlined_call_operand.vmem [shape: f32[1,32], index: 9, kind: input, shape index: {}]   ;;  %s1626_s10 = inlined_call_operand.hbm [shape: f32[2,8,32], index: 10, kind: output, shape index: {0}]   ;;  %s1627_s11 = inlined_call_operand.hbm [shape: f32[2,4,8,8], index: 11, kind: output, shape index: {1}]  }
   0x1   :  { %18 = vsyncpa [#allocation6], 0 }
   0x2   :  { %19 = vsyncpa [#allocation9], 0 }
   0x3   :  { %20 = vsyncpa [#allocation4], 0 }
   0x4   :  { %21 = vsyncpa [#allocation12], 0  ;;  %s39_s19 = sshll.u32 %s1617_s1, 4  ;;  %s1277_s20 = smov [#allocation5]   ;;  %s40_s19 = int_to_ptr.hbm [resolvable:$true] %s39_s19 }
   0x5   :  { %s41_s21 = sshll.u32 %s1277_s20, 4  ;;  %s26_s24 = sshll.u32 %s1616_s0, 4  ;;  %s42_s21 = int_to_ptr.vmem [resolvable:$true] %s41_s21  ;;  %s27_s24 = int_to_ptr.hbm [resolvable:$true] %s26_s24 }
   0x6   :  { %s1278_s25 = smov 128   ;;  %s1279_s26 = smov 8  }
   0x7   :  { %47 = dma.hbm_to_vmem [thread:$0]  %s40_s19, 256, %s42_s21, [#allocation6], %s1278_s25, %s1278_s25, %s1279_s26  }
   0x8   :  { %s1280_s27 = smov [#allocation2]   ;;  %s52_s1 = sshll.u32 %s1618_s2, 4  ;;  %s53_s1 = int_to_ptr.hbm [resolvable:$true] %s52_s1 }
   0x9   :  { %s28_s28 = sshll.u32 %s1280_s27, 4  ;;  %s65_s13 = sshll.u32 %s1619_s3, 4  ;;  %s29_s28 = int_to_ptr.vmem [resolvable:$true] %s28_s28  ;;  %s66_s13 = int_to_ptr.hbm [resolvable:$true] %s65_s13 }
   0xa   :  { %34 = dma.hbm_to_vmem [thread:$0]  %s27_s24, 256, %s29_s28, [#allocation3], %s1278_s25, %s1278_s25, %s1279_s26  }
   0xb   :  { %s1281_s14 = smov [#allocation7]   ;;  %s1282_s16 = smov [#allocation8]  }
   0xc   :  { %s54_s15 = sshll.u32 %s1281_s14, 4  ;;  %s67_s2 = sshll.u32 %s1282_s16, 4  ;;  %s55_s15 = int_to_ptr.vmem [resolvable:$true] %s54_s15  ;;  %s68_s2 = int_to_ptr.vmem [resolvable:$true] %s67_s2 }
   0xd   :  { %60 = dma.hbm_to_vmem [thread:$0]  %s53_s1, 256, %s55_s15, [#allocation6], %s1278_s25, %s1278_s25, %s1279_s26  }
   0xe   :  { %73 = dma.hbm_to_vmem [thread:$0]  %s66_s13, 256, %s68_s2, [#allocation9], %s1278_s25, %s1278_s25, %s1279_s26  }
   0xf   :  { %1267 = dma.done.wait [#allocation3], 256  }
  0x10   :  { %1268 = vsyncadd [#allocation3], 4294967040 }
  0x11   :  { %1269 = dma.done.wait [#allocation6], 512  }
  0x12   :  { %1270 = vsyncadd [#allocation6], 4294966784 }
  0x13   :  { %1271 = dma.done.wait [#allocation9], 256  }
  0x14   :  { %1272 = vsyncadd [#allocation9], 4294967040  ;;  %v145_v0 = vld [vmem:[%s1621_s5 + $0x18] sm:$0xff]  ;;  %v144_v1 = vld [vmem:[%s1621_s5 + $0x10] sm:$0xff]  ;;  %vm112_vm0 = vcmask 261120   ;;  %vm212_vm1 = vcmask 130048  }
  0x15   :  { %164 = vmatpush.msra.mxu2 %v145_v0  ;;  %v111_v2 = vld [vmem:[%s1620_s4 + $0x18] sm:$0xff]  ;;  %v143_v3 = vld [vmem:[%s1621_s5 + $0x8] sm:$0xff]  ;;  %v110_v4 = vld [vmem:[%s1620_s4 + $0x10] sm:$0xff]  ;;  %s1285_s13 = smov 112   ;;  %vm453_vm3 = vcmask 64512   ;;  %s1287_s20 = smov 32  }
  0x16   :  { %131 = vmatpush.msra.mxu0 %v111_v2  ;;  %v109_v5 = vld [vmem:[%s1620_s4 + $0x8] sm:$0xff]  ;;  %v142_v6 = vld [vmem:[%s1621_s5] sm:$0xff]  ;;  %v104_v7 = vld [vmem:[#allocation5] sm:$0xff]  ;;  %s1284_s5 = smov 80   ;;  %s1288_s21 = smov 48  }
  0x17   :  { %165 = vmatpush.msra.mxu2 %v144_v1  ;;  %v108_v8 = vld [vmem:[%s1620_s4] sm:$0xff]  ;;  %v105_v10 = vld [vmem:[#allocation5 + $0x8] sm:$0xff]  ;;  %v1405_v11 = vld [vmem:[#allocation2 + $0x8] sm:$0xff]  ;;  %s1283_s4 = smov 96   ;;  %s1011_s18 = sshll.u32 %s1627_s11, 4  ;;  %s1012_s18 = int_to_ptr.hbm [resolvable:$true] %s1011_s18 }
  0x18   :  { %132 = vmatpush.msra.mxu0 %v110_v4  ;;  %v1400_v9 = vld [vmem:[#allocation2] sm:$0xff]  ;;  %v178_v20 = vld [vmem:[%s1622_s6 + $0x18] sm:$0xff]  ;;  %v177_v21 = vld [vmem:[%s1622_s6 + $0x10] sm:$0xff]  ;;  %s998_s24 = sshll.u32 %s1626_s10, 4  ;;  %s999_s24 = int_to_ptr.hbm [resolvable:$true] %s998_s24 }
  0x19   :  { %166 = vmatpush.msra.mxu2 %v143_v3  ;;  %v176_v22 = vld [vmem:[%s1622_s6 + $0x8] sm:$0xff]  ;;  %v175_v23 = vld [vmem:[%s1622_s6] sm:$0xff]  ;;  %v208_v31 = vld [vmem:[#allocation8] sm:$0xff]  ;;  %s1286_s6 = smov 16  }
  0x1a   :  { %133 = vmatpush.msra.mxu0 %v109_v5  ;;  %v106_v24 = vld [vmem:[#allocation7] sm:$0xff]  ;;  %v107_v27 = vld [vmem:[#allocation7 + $0x8] sm:$0xff]  ;;  %vm210_vm2 = vcmp.ne.s32.totalorder %v208_v31, 0  ;;  %v209_v38 = vld [vmem:[#allocation8 + $0x8] sm:$0xff] }
  0x1b   :  { %167 = vmatpush.msra.mxu2 %v142_v6  ;;  %vm211_vm4 = vcmp.ne.s32.totalorder %v209_v38, 0 }
  0x1c   :  { %1033 = vmatmul.msk.f32.vlgmr.msra.gmra.mxu2 %vm112_vm0, %v104_v7  ;;  %134 = vmatpush.msra.mxu0 %v108_v8 }
  0x1d   :  { %1031 = vmatmul.msk.f32.vlgmr.msra.gmra.mxu0 %vm112_vm0, %v1400_v9  ;;  %197 = vmatpush.msrb.mxu2 %v178_v20 }
  0x1f   :  { %198 = vmatpush.msrb.mxu2 %v177_v21 }
  0x21   :  { %199 = vmatpush.msrb.mxu2 %v176_v22 }
  0x23   :  { %200 = vmatpush.msrb.mxu2 %v175_v23 }
  0x24   :  { %1034 = vmatmul.msk.f32.gmra.mxu2 %vm112_vm0, %v105_v10 }
  0x25   :  { %1032 = vmatmul.msk.f32.gmra.mxu0 %vm112_vm0, %v1405_v11 }
  0x2c   :  { %1035 = vmatmul.msk.f32.vlgmr.msrb.gmra.mxu2 %vm112_vm0, %v106_v24 }
  0x34   :  { %1036 = vmatmul.msk.f32.gmra.mxu2 %vm112_vm0, %v107_v27 }
  0x9a   :  { %v136_v13 = vpop.f32.mrf.mxu0 }
  0x9f   :  { %v169_v12 = vpop.f32.mrf.mxu2 }
  0xa0   :  { %323 = vrot.lane.b32.xlu2 %v169_v12, %s1283_s4  ;;  %379 = vrot.lane.b32.xlu1 %v169_v12, %s1284_s5 }
  0xa1   :  { %267 = vrot.lane.b32.xlu0 %v169_v12, %s1285_s13  ;;  %1037 = vmatpush.xpose.msk.msra.mxu3 %vm212_vm1, %v169_v12 }
  0xa2   :  { %v139_v15 = vpop.f32.mrf.mxu0 }
  0xa4   :  { %1038 = vmatmul.msk.f32.vlgmr.msra.gmra.mxu3 %vm212_vm1, %v136_v13 }
  0xa7   :  { %v172_v14 = vpop.f32.mrf.mxu2 }
  0xa8   :  { %1039 = vmatpush.xpose.msk.msrb.mxu3 %vm212_vm1, %v172_v14  ;;  %321 = vrot.lane.b32.xlu2 %v136_v13, %s1283_s4 }
  0xa9   :  { %377 = vrot.lane.b32.xlu1 %v136_v13, %s1284_s5  ;;  %265 = vrot.lane.b32.xlu0 %v136_v13, %s1285_s13 }
  0xac   :  { %1040 = vmatmul.msk.f32.vlgmr.msrb.gmra.mxu3 %vm212_vm1, %v139_v15 }
  0xaf   :  { %v1456_v46 = vpop.f32.mrf.mxu2 }
  0xb0   :  { %293 = vrot.lane.b32.xlu2 %v139_v15, %s1285_s13 }
  0xb1   :  { %351 = vrot.lane.b32.xlu1 %v172_v14, %s1283_s4  ;;  %295 = vrot.lane.b32.xlu0 %v172_v14, %s1285_s13 }
  0xb7   :  { %v1479_v12 = vpop.f32.mrf.mxu2 }
  0xb8   :  { %405 = vrot.lane.b32.xlu2 %v139_v15, %s1284_s5  ;;  %695 = vmatpush.msra.mxu2 %v1479_v12 }
  0xb9   :  { %407 = vrot.lane.b32.xlu1 %v172_v14, %s1284_s5  ;;  %349 = vrot.lane.b32.xlu0 %v139_v15, %s1283_s4 }
  0xfa   :  { %v324_v16 = vpop.permute.xlu2 %323 }
  0xfb   :  { %1045 = vmatpush.xpose.msk.msra.mxu1 %vm212_vm1, %v324_v16 }
 0x102   :  { %v322_v17 = vpop.permute.xlu2 %321 }
 0x103   :  { %1046 = vmatmul.msk.f32.vlgmr.msra.gmra.mxu1 %vm212_vm1, %v322_v17 }
 0x10a   :  { %v294_v30 = vpop.permute.xlu2 %293 }
 0x112   :  { %v380_v18 = vpop.permute.xlu1 %379  ;;  %v406_v39 = vpop.permute.xlu2 %405 }
 0x113   :  { %v268_v19 = vpop.permute.xlu0 %267 }
 0x114   :  { %1041 = vmatpush.xpose.msk.msra.mxu3 %vm212_vm1, %v268_v19 }
 0x118   :  { %1049 = vmatpush.xpose.msk.msrb.mxu3 %vm212_vm1, %v380_v18 }
 0x11b   :  { %v378_v25 = vpop.permute.xlu1 %377  ;;  %v266_v26 = vpop.permute.xlu0 %265 }
 0x11c   :  { %1042 = vmatmul.msk.f32.vlgmr.msra.gmra.mxu3 %vm212_vm1, %v266_v26 }
 0x123   :  { %v352_v28 = vpop.permute.xlu1 %351  ;;  %v296_v29 = vpop.permute.xlu0 %295 }
 0x124   :  { %1043 = vmatpush.xpose.msk.msrb.mxu0 %vm212_vm1, %v296_v29  ;;  %1047 = vmatpush.xpose.msk.msrb.mxu1 %vm212_vm1, %v352_v28 }
 0x125   :  { %1050 = vmatmul.msk.f32.vlgmr.msrb.gmra.mxu3 %vm212_vm1, %v378_v25 }
 0x127   :  { %v236_v32 = vpop.f32.mrf.mxu3  ;;  %1044 = vmatmul.msk.f32.vlgmr.msrb.gmra.mxu0 %vm212_vm1, %v294_v30 }
 0x128   :  { %v433_v33 = vmul.f32 0.25, %v236_v32  ;;  %672 = vmatpush.msra.mxu1 %v1456_v46 }
 0x12a   :  { %v445_v34 = vsel %vm210_vm2, -1e+09, %v433_v33 }
 0x12b   :  { %v408_v35 = vpop.permute.xlu1 %407  ;;  %v350_v36 = vpop.permute.xlu0 %349  ;;  %v454_v37 = vsel %vm453_vm3, %v445_v34, -inf }
 0x12c   :  { %1051 = vmatpush.xpose.msk.msra.mxu0 %vm212_vm1, %v408_v35  ;;  %455 = vmax.xlane.f32.xlu1 %v454_v37 }
 0x12d   :  { %1048 = vmatmul.msk.f32.vlgmr.msrb.gmra.mxu1 %vm212_vm1, %v350_v36 }
 0x12f   :  { %v262_v40 = vpop.f32.mrf.mxu3  ;;  %1052 = vmatmul.msk.f32.vlgmr.msra.gmra.mxu0 %vm212_vm1, %v406_v39 }
 0x130   :  { %v437_v41 = vmul.f32 0.25, %v262_v40 }
 0x132   :  { %v449_v42 = vsel %vm211_vm4, -1e+09, %v437_v41 }
 0x133   :  { %v466_v43 = vsel %vm453_vm3, %v449_v42, -inf }
 0x134   :  { %467 = vmax.xlane.f32.xlu2 %v466_v43 }
 0x180   :  { %v346_v47 = vpop.f32.mrf.mxu1 }
 0x181   :  { %v435_v50 = vmul.f32 0.25, %v346_v47 }
 0x183   :  { %v447_v56 = vsel %vm210_vm2, -1e+09, %v435_v50 }
 0x184   :  { %v460_v60 = vsel %vm453_vm3, %v447_v56, -inf }
 0x19f   :  { %v290_v44 = vpop.f32.mrf.mxu3  ;;  %v456_v13 = vpop.xlane.xlu1 %455 }
 0x1a0   :  { %v434_v45 = vmul.f32 0.25, %v290_v44  ;;  %v478_v14 = vsub.f32 %v445_v34, %v456_v13 }
 0x1a2   :  { %v446_v48 = vsel %vm210_vm2, -1e+09, %v434_v45  ;;  %v486_v15 = vmul.f32 1.442695, %v478_v14 }
 0x1a3   :  { %v457_v49 = vsel %vm453_vm3, %v446_v48, -inf }
 0x1a4   :  { %v318_v51 = vpop.f32.mrf.mxu0  ;;  %458 = vmax.xlane.f32.xlu0 %v457_v49 }
 0x1a5   :  { %v438_v52 = vmul.f32 0.25, %v318_v51 }
 0x1a7   :  { %v468_v53 = vpop.xlane.xlu2 %467  ;;  %v450_v54 = vsel %vm211_vm4, -1e+09, %v438_v52 }
 0x1a8   :  { %v469_v55 = vsel %vm453_vm3, %v450_v54, -inf  ;;  %v482_v57 = vsub.f32 %v449_v42, %v468_v53  ;;  %v402_v61 = vpop.f32.mrf.mxu3 }
 0x1a9   :  { %470 = vmax.xlane.f32.xlu1 %v469_v55  ;;  %v436_v3 = vmul.f32 0.25, %v402_v61 }
 0x1aa   :  { %v374_v58 = vpop.f32.mrf.mxu1  ;;  %v494_v1 = vmul.f32 1.442695, %v482_v57 }
 0x1ab   :  { %v439_v59 = vmul.f32 0.25, %v374_v58  ;;  %v448_v6 = vsel %vm210_vm2, -1e+09, %v436_v3 }
 0x1ac   :  { %v430_v62 = vpop.f32.mrf.mxu0  ;;  %461 = vmax.xlane.f32.xlu0 %v460_v60  ;;  %1085 = vpow2.f32 %v494_v1  ;;  %v463_v7 = vsel %vm453_vm3, %v448_v6, -inf }
 0x1ad   :  { %v440_v63 = vmul.f32 0.25, %v430_v62  ;;  %v451_v0 = vsel %vm211_vm4, -1e+09, %v439_v59  ;;  %1087 = vpow2.f32 %v486_v15  ;;  %v1078_v62 = vpack.i.bf16 %v1479_v12, %v1456_v46 }
 0x1ae   :  { %v472_v2 = vsel %vm453_vm3, %v451_v0, -inf }
 0x1af   :  { %473 = vmax.xlane.f32.xlu2 %v472_v2  ;;  %v452_v4 = vsel %vm211_vm4, -1e+09, %v440_v63 }
 0x1b0   :  { %v475_v5 = vsel %vm453_vm3, %v452_v4, -inf }
 0x1b2   :  { %v1471_v8 = vpop.eup %1085 }
 0x1b3   :  { %v514_v10 = vsel %vm453_vm3, %v1471_v8, 0.0  ;;  %v1482_v16 = vpop.eup %1087 }
 0x1b4   :  { %476 = vmax.xlane.f32.xlu0 %v475_v5  ;;  %v502_v17 = vsel %vm453_vm3, %v1482_v16, 0.0 }
 0x1b7   :  { %464 = vmax.xlane.f32.xlu2 %v463_v7 }
 0x1bc   :  { %515 = vadd.xlane.f32.xlu0 %v514_v10 }
 0x1c2   :  { %806 = vrot.lane.b32.xlu1 %v1456_v46, %s1284_s5 }
 0x1cf   :  { %701 = vrot.lane.b32.xlu2 %v1456_v46, %s1285_s13 }
 0x1f8   :  { %503 = vadd.xlane.f32.xlu2 %v502_v17 }
 0x217   :  { %v459_v18 = vpop.xlane.xlu0 %458 }
 0x218   :  { %v479_v19 = vsub.f32 %v446_v48, %v459_v18 }
 0x21a   :  { %v488_v20 = vmul.f32 1.442695, %v479_v19 }
 0x21c   :  { %1089 = vpow2.f32 %v488_v20  ;;  %v471_v21 = vpop.xlane.xlu1 %470 }
 0x21d   :  { %v483_v22 = vsub.f32 %v450_v54, %v471_v21 }
 0x21f   :  { %v496_v23 = vmul.f32 1.442695, %v483_v22  ;;  %v462_v24 = vpop.xlane.xlu0 %461 }
 0x220   :  { %v480_v25 = vsub.f32 %v447_v56, %v462_v24 }
 0x221   :  { %1091 = vpow2.f32 %v496_v23 }
 0x222   :  { %v1486_v26 = vpop.eup %1089  ;;  %v490_v27 = vmul.f32 1.442695, %v480_v25  ;;  %v474_v28 = vpop.xlane.xlu2 %473 }
 0x223   :  { %v484_v29 = vsub.f32 %v451_v0, %v474_v28  ;;  %v505_v30 = vsel %vm453_vm3, %v1486_v26, 0.0 }
 0x224   :  { %1093 = vpow2.f32 %v490_v27  ;;  %506 = vadd.xlane.f32.xlu1 %v505_v30 }
 0x225   :  { %v498_v31 = vmul.f32 1.442695, %v484_v29 }
 0x227   :  { %v1490_v32 = vpop.eup %1091  ;;  %1095 = vpow2.f32 %v498_v31  ;;  %v477_v33 = vpop.xlane.xlu0 %476 }
 0x228   :  { %v485_v34 = vsub.f32 %v452_v4, %v477_v33  ;;  %v517_v35 = vsel %vm453_vm3, %v1490_v32, 0.0 }
 0x229   :  { %518 = vadd.xlane.f32.xlu0 %v517_v35 }
 0x22a   :  { %v1494_v36 = vpop.eup %1093  ;;  %v500_v37 = vmul.f32 1.442695, %v485_v34  ;;  %v465_v38 = vpop.xlane.xlu2 %464 }
 0x22b   :  { %v481_v39 = vsub.f32 %v448_v6, %v465_v38  ;;  %v508_v40 = vsel %vm453_vm3, %v1494_v36, 0.0 }
 0x22c   :  { %1097 = vpow2.f32 %v500_v37  ;;  %509 = vadd.xlane.f32.xlu2 %v508_v40 }
 0x22d   :  { %v1498_v41 = vpop.eup %1095  ;;  %v492_v42 = vmul.f32 1.442695, %v481_v39 }
 0x22e   :  { %v520_v43 = vsel %vm453_vm3, %v1498_v41, 0.0 }
 0x22f   :  { %1099 = vpow2.f32 %v492_v42  ;;  %521 = vadd.xlane.f32.xlu1 %v520_v43  ;;  %v516_v44 = vpop.xlane.xlu0 %515 }
 0x230   :  { %1101 = vrcp.f32 %v516_v44  ;;  %v597_v54 = vand.u32 2147483648, %v516_v44  ;;  %v595_v56 = vand.u32 2147483647, %v516_v44  ;;  %vm591_vm6 = vweird.f32 %v516_v44 }
 0x232   :  { %v1502_v45 = vpop.eup %1097  ;;  %v702_v47 = vpop.permute.xlu2 %701  ;;  %v598_v58 = vor.u32 1.1754944e-38, %v597_v54  ;;  %vm596_vm8 = vcmp.eq.f32.partialorder %v595_v56, 8.507059e+37 }
 0x233   :  { %v523_v48 = vsel %vm453_vm3, %v1502_v45, 0.0  ;;  %722 = vmatpush.msra.mxu3 %v702_v47 }
 0x234   :  { %524 = vadd.xlane.f32.xlu0 %v523_v48  ;;  %v807_v63 = vpop.permute.xlu1 %806 }
 0x235   :  { %v1506_v49 = vpop.eup %1099  ;;  %827 = vmatpush.msrb.mxu3 %v807_v63 }
 0x236   :  { %v1102_v50 = vpop.eup %1101  ;;  %v511_v51 = vsel %vm453_vm3, %v1506_v49, 0.0 }
 0x237   :  { %v587_v52 = vmul.f32 %v1102_v50, %v516_v44  ;;  %512 = vadd.xlane.f32.xlu1 %v511_v51  ;;  %vm592_vm5 = vweird.f32 %v1102_v50 }
 0x238   :  { %vm593_vm7 = vmor %vm591_vm6, %vm592_vm5 }
 0x239   :  { %v588_v53 = vsub.f32 1.0, %v587_v52 }
 0x23b   :  { %v589_v55 = vmul.f32 %v1102_v50, %v588_v53 }
 0x23d   :  { %v590_v57 = vadd.f32 %v1102_v50, %v589_v55 }
 0x23f   :  { %v594_v59 = vsel %vm593_vm7, %v1102_v50, %v590_v57 }
 0x240   :  { %v599_v60 = vsel %vm596_vm8, %v598_v58, %v594_v59 }
 0x241   :  { %v600_v61 = vmul.f32 %v1471_v8, %v599_v60 }
 0x243   :  { %650 = vst.msk [vmem:[#allocation11 + $0x20] sm:$0xff] %vm453_vm3, %v600_v61  ;;  %1054 = vmatmul.msk.f32.vlgmr.msra.gmra.mxu2 %vm453_vm3, %v600_v61 }
 0x244   :  { %728 = vrot.lane.b32.xlu2 %v1479_v12, %s1285_s13 }
 0x248   :  { %1079 = vrot.lane.b32.xlu0 %v1078_v62, %s1283_s4 }
 0x250   :  { %832 = vrot.lane.b32.xlu1 %v1479_v12, %s1284_s5 }
 0x26b   :  { %v504_v0 = vpop.xlane.xlu2 %503 }
 0x26c   :  { %1103 = vrcp.f32 %v504_v0  ;;  %v537_v4 = vand.u32 2147483648, %v504_v0  ;;  %v535_v6 = vand.u32 2147483647, %v504_v0  ;;  %vm531_vm10 = vweird.f32 %v504_v0 }
 0x26e   :  { %v538_v46 = vor.u32 1.1754944e-38, %v537_v4  ;;  %vm536_vm12 = vcmp.eq.f32.partialorder %v535_v6, 8.507059e+37 }
 0x272   :  { %v1104_v1 = vpop.eup %1103 }
 0x273   :  { %v527_v2 = vmul.f32 %v1104_v1, %v504_v0  ;;  %vm532_vm9 = vweird.f32 %v1104_v1 }
 0x274   :  { %vm533_vm11 = vmor %vm531_vm10, %vm532_vm9 }
 0x275   :  { %v528_v3 = vsub.f32 1.0, %v527_v2 }
 0x277   :  { %v529_v5 = vmul.f32 %v1104_v1, %v528_v3 }
 0x279   :  { %v530_v7 = vadd.f32 %v1104_v1, %v529_v5 }
 0x27b   :  { %v534_v8 = vsel %vm533_vm11, %v1104_v1, %v530_v7 }
 0x27c   :  { %v539_v10 = vsel %vm536_vm12, %v538_v46, %v534_v8 }
 0x27d   :  { %v540_v13 = vmul.f32 %v1482_v16, %v539_v10 }
 0x27f   :  { %646 = vst.msk [vmem:[#allocation11] sm:$0xff] %vm453_vm3, %v540_v13  ;;  %1053 = vmatmul.msk.f32.vlgmr.msra.gmra.mxu1 %vm453_vm3, %v540_v13 }
 0x297   :  { %v507_v12 = vpop.xlane.xlu1 %506 }
 0x298   :  { %1105 = vrcp.f32 %v507_v12  ;;  %v552_v20 = vand.u32 2147483648, %v507_v12  ;;  %v550_v16 = vand.u32 2147483647, %v507_v12  ;;  %vm546_vm14 = vweird.f32 %v507_v12 }
 0x29a   :  { %v553_v28 = vor.u32 1.1754944e-38, %v552_v20  ;;  %vm551_vm2 = vcmp.eq.f32.partialorder %v550_v16, 8.507059e+37 }
 0x29c   :  { %v519_v14 = vpop.xlane.xlu0 %518 }
 0x29d   :  { %1107 = vrcp.f32 %v519_v14  ;;  %v612_v30 = vand.u32 2147483648, %v519_v14  ;;  %v610_v33 = vand.u32 2147483647, %v519_v14  ;;  %vm606_vm5 = vweird.f32 %v519_v14 }
 0x29e   :  { %v1106_v15 = vpop.eup %1105 }
 0x29f   :  { %v542_v17 = vmul.f32 %v1106_v15, %v507_v12  ;;  %v510_v18 = vpop.xlane.xlu2 %509  ;;  %vm547_vm13 = vweird.f32 %v1106_v15  ;;  %v613_v48 = vor.u32 1.1754944e-38, %v612_v30  ;;  %vm611_vm8 = vcmp.eq.f32.partialorder %v610_v33, 8.507059e+37 }
 0x2a0   :  { %1109 = vrcp.f32 %v510_v18  ;;  %vm548_vm15 = vmor %vm546_vm14, %vm547_vm13  ;;  %v567_v43 = vand.u32 2147483648, %v510_v18  ;;  %v565_v53 = vand.u32 2147483647, %v510_v18  ;;  %vm561_vm9 = vweird.f32 %v510_v18 }
 0x2a1   :  { %v543_v19 = vsub.f32 1.0, %v542_v17 }
 0x2a2   :  { %v1523_v21 = vpop.xlane.xlu1 %521  ;;  %v568_v57 = vor.u32 1.1754944e-38, %v567_v43  ;;  %vm566_vm12 = vcmp.eq.f32.partialorder %v565_v53, 8.507059e+37  ;;  %v893_v43 = vld [vmem:[%s1623_s7 + $0x20] sm:$0xff] }
 0x2a3   :  { %v1108_v22 = vpop.eup %1107  ;;  %v544_v23 = vmul.f32 %v1106_v15, %v543_v19  ;;  %1111 = vrcp.f32 %v1523_v21  ;;  %v627_v58 = vand.u32 2147483648, %v1523_v21  ;;  %v625_v61 = vand.u32 2147483647, %v1523_v21 }
 0x2a4   :  { %v602_v24 = vmul.f32 %v1108_v22, %v519_v14  ;;  %vm607_vm4 = vweird.f32 %v1108_v22  ;;  %vm621_vm13 = vweird.f32 %v1523_v21 }
 0x2a5   :  { %v545_v25 = vadd.f32 %v1106_v15, %v544_v23  ;;  %vm608_vm6 = vmor %vm606_vm5, %vm607_vm4  ;;  %v628_v4 = vor.u32 1.1754944e-38, %v627_v58 }
 0x2a6   :  { %v1110_v27 = vpop.eup %1109  ;;  %v603_v29 = vsub.f32 1.0, %v602_v24 }
 0x2a7   :  { %v549_v31 = vsel %vm548_vm15, %v1106_v15, %v545_v25  ;;  %v557_v34 = vmul.f32 %v1110_v27, %v510_v18  ;;  %v1526_v35 = vpop.xlane.xlu0 %524  ;;  %v729_v37 = vpop.permute.xlu2 %728  ;;  %vm562_vm7 = vweird.f32 %v1110_v27  ;;  %vm626_vm15 = vcmp.eq.f32.partialorder %v625_v61, 8.507059e+37 }
 0x2a8   :  { %v554_v38 = vsel %vm551_vm2, %v553_v28, %v549_v31  ;;  %v604_v39 = vmul.f32 %v1108_v22, %v603_v29  ;;  %1113 = vrcp.f32 %v1526_v35  ;;  %749 = vmatpush.msrb.mxu0 %v729_v37  ;;  %vm563_vm10 = vmor %vm561_vm9, %vm562_vm7  ;;  %v640_v13 = vand.u32 2147483647, %v1526_v35 }
 0x2a9   :  { %v1112_v40 = vpop.eup %1111  ;;  %v558_v42 = vsub.f32 1.0, %v557_v34  ;;  %v555_v44 = vmul.f32 %v1486_v26, %v554_v38  ;;  %vm636_vm4 = vweird.f32 %v1526_v35 }
 0x2aa   :  { %v605_v47 = vadd.f32 %v1108_v22, %v604_v39  ;;  %v617_v50 = vmul.f32 %v1112_v40, %v1523_v21  ;;  %v1531_v51 = vpop.xlane.xlu1 %512  ;;  %vm622_vm11 = vweird.f32 %v1112_v40  ;;  %vm641_vm7 = vcmp.eq.f32.partialorder %v640_v13, 8.507059e+37  ;;  %v896_v39 = vld [vmem:[%s1623_s7 + $0x38] sm:$0xff] }
 0x2ab   :  { %v559_v52 = vmul.f32 %v1110_v27, %v558_v42  ;;  %1115 = vrcp.f32 %v1531_v51  ;;  %647 = vst.msk [vmem:[#allocation11 + $0x8] sm:$0xff] %vm453_vm3, %v555_v44  ;;  %1055 = vmatmul.msk.f32.vlgmr.msra.gmra.mxu3 %vm453_vm3, %v555_v44  ;;  %vm623_vm14 = vmor %vm621_vm13, %vm622_vm11  ;;  %v580_v19 = vand.u32 2147483647, %v1531_v51  ;;  %v894_v42 = vld [vmem:[%s1623_s7 + $0x28] sm:$0xff]  ;;  %v892_v44 = vld [vmem:[%s1623_s7 + $0x18] sm:$0xff]  ;;  %vm897_vm11 = vcmask 523264  }
 0x2ac   :  { %v609_v54 = vsel %vm608_vm6, %v1108_v22, %v605_v47  ;;  %v618_v26 = vsub.f32 1.0, %v617_v50  ;;  %v891_v47 = vld [vmem:[%s1623_s7 + $0x10] sm:$0xff]  ;;  %v889_v50 = vld [vmem:[%s1623_s7] sm:$0xff] }
 0x2ad   :  { %v614_v55 = vsel %vm611_vm8, %v613_v48, %v609_v54  ;;  %v560_v56 = vadd.f32 %v1110_v27, %v559_v52  ;;  %vm576_vm8 = vweird.f32 %v1531_v51  ;;  %v890_v48 = vld [vmem:[%s1623_s7 + $0x8] sm:$0xff] }
 0x2ae   :  { %v1114_v59 = vpop.eup %1113  ;;  %v619_v60 = vmul.f32 %v1112_v40, %v618_v26  ;;  %v615_v62 = vmul.f32 %v1490_v32, %v614_v55  ;;  %v642_v32 = vand.u32 2147483648, %v1526_v35 }
 0x2af   :  { %v564_v63 = vsel %vm563_vm10, %v1110_v27, %v560_v56  ;;  %v632_v0 = vmul.f32 %v1114_v59, %v1526_v35  ;;  %vm637_vm2 = vweird.f32 %v1114_v59  ;;  %vm581_vm10 = vcmp.eq.f32.partialorder %v580_v19, 8.507059e+37 }
 0x2b0   :  { %v569_v1 = vsel %vm566_vm12, %v568_v57, %v564_v63  ;;  %v620_v2 = vadd.f32 %v1112_v40, %v619_v60  ;;  %651 = vst.msk [vmem:[#allocation11 + $0x28] sm:$0xff] %vm453_vm3, %v615_v62  ;;  %1056 = vmatmul.msk.f32.vlgmr.msrb.gmra.mxu0 %vm453_vm3, %v615_v62  ;;  %vm638_vm5 = vmor %vm636_vm4, %vm637_vm2  ;;  %v643_v17 = vor.u32 1.1754944e-38, %v642_v32 }
 0x2b1   :  { %v1116_v3 = vpop.eup %1115  ;;  %v633_v5 = vsub.f32 1.0, %v632_v0  ;;  %v570_v6 = vmul.f32 %v1494_v36, %v569_v1  ;;  %v582_v36 = vand.u32 2147483648, %v1531_v51 }
 0x2b2   :  { %v624_v7 = vsel %vm623_vm14, %v1112_v40, %v620_v2  ;;  %v572_v46 = vmul.f32 %v1116_v3, %v1531_v51  ;;  %vm577_vm6 = vweird.f32 %v1116_v3  ;;  %v895_v40 = vld [vmem:[%s1623_s7 + $0x30] sm:$0xff]  ;;  %s1290_s7 = smov [#allocation11]  }
 0x2b3   :  { %v629_v8 = vsel %vm626_vm15, %v628_v4, %v624_v7  ;;  %v634_v10 = vmul.f32 %v1114_v59, %v633_v5  ;;  %648 = vst.msk [vmem:[#allocation11 + $0x10] sm:$0xff] %vm453_vm3, %v570_v6  ;;  %vm578_vm9 = vmor %vm576_vm8, %vm577_vm6  ;;  %v1289_v4 = vmov 32.0   ;;  %s1009_s2 = sshll.u32 %s1290_s7, 4  ;;  %s1010_s2 = int_to_ptr.vmem [resolvable:$true] %s1009_s2 }
 0x2b4   :  { %v573_v12 = vsub.f32 1.0, %v572_v46  ;;  %v630_v14 = vmul.f32 %v1498_v41, %v629_v8  ;;  %v583_v41 = vor.u32 1.1754944e-38, %v582_v36  ;;  %1117 = vrcp.f32 %v1289_v4 }
 0x2b5   :  { %v635_v15 = vadd.f32 %v1114_v59, %v634_v10 }
 0x2b6   :  { %v574_v18 = vmul.f32 %v1116_v3, %v573_v12  ;;  %652 = vst.msk [vmem:[#allocation11 + $0x30] sm:$0xff] %vm453_vm3, %v630_v14 }
 0x2b7   :  { %v639_v20 = vsel %vm638_vm5, %v1114_v59, %v635_v15 }
 0x2b8   :  { %v644_v21 = vsel %vm641_vm7, %v643_v17, %v639_v20  ;;  %v575_v22 = vadd.f32 %v1116_v3, %v574_v18 }
 0x2b9   :  { %v645_v23 = vmul.f32 %v1502_v45, %v644_v21 }
 0x2ba   :  { %v579_v16 = vsel %vm578_vm9, %v1116_v3, %v575_v22  ;;  %v1080_v24 = vpop.permute.xlu0 %1079  ;;  %v1118_v5 = vpop.eup %1117 }
 0x2bb   :  { %v584_v25 = vsel %vm581_vm10, %v583_v41, %v579_v16  ;;  %v1082_v27 = vunpack.i.h.bf16 %v1080_v24  ;;  %v1081_v28 = vunpack.i.l.bf16 %v1080_v24  ;;  %653 = vst.msk [vmem:[#allocation11 + $0x38] sm:$0xff] %vm453_vm3, %v645_v23 }
 0x2bc   :  { %v585_v29 = vmul.f32 %v1506_v49, %v584_v25 }
 0x2bd   :  { %775 = vmatpush.msrb.mxu1 %v1081_v28  ;;  %801 = vmatpush.msrb.mxu2 %v1082_v27 }
 0x2be   :  { %649 = vst.msk [vmem:[#allocation11 + $0x18] sm:$0xff] %vm453_vm3, %v585_v29  ;;  %1059 = vmatmul.msk.f32.vlgmr.msrb.gmra.mxu3 %vm453_vm3, %v585_v29  ;;  %1057 = vmatmul.msk.f32.vlgmr.msrb.gmra.mxu1 %vm453_vm3, %v570_v6  ;;  %v934_v6 = vmul.f32 32.0, %v1118_v5 }
 0x2bf   :  { %1058 = vmatmul.msk.f32.vlgmr.msrb.gmra.mxu2 %vm453_vm3, %v630_v14  ;;  %912 = vmatpush.msra.mxu1 %v896_v39  ;;  %1017 = dma.vmem_to_hbm [thread:$0]  %s1010_s2, 1024, %s1012_s18, [#allocation12], %s1278_s25, %s1278_s25, %s1279_s26  }
 0x2c0   :  { %v935_v7 = vsub.f32 1.0, %v934_v6 }
 0x2c1   :  { %913 = vmatpush.msra.mxu1 %v895_v40 }
 0x2c2   :  { %v833_v45 = vpop.permute.xlu1 %832  ;;  %v936_v32 = vmul.f32 %v1118_v5, %v935_v7 }
 0x2c3   :  { %853 = vmatpush.msra.mxu0 %v833_v45  ;;  %914 = vmatpush.msra.mxu1 %v894_v42 }
 0x2c4   :  { %1060 = vmatmul.msk.f32.vlgmr.msra.gmra.mxu0 %vm453_vm3, %v645_v23  ;;  %vm886_vm3 = vcmask 392192   ;;  %v937_v46 = vadd.f32 %v1118_v5, %v936_v32 }
 0x2c5   :  { %915 = vmatpush.msra.mxu1 %v893_v43 }
 0x2c6   :  { %v697_v49 = vpop.f32.mrf.mxu2 }
 0x2c7   :  { %916 = vmatpush.msra.mxu1 %v892_v44 }
 0x2c9   :  { %917 = vmatpush.msra.mxu1 %v891_v47 }
 0x2cb   :  { %918 = vmatpush.msra.mxu1 %v890_v48 }
 0x2cd   :  { %919 = vmatpush.msra.mxu1 %v889_v50 }
 0x2fc   :  { %v674_v31 = vpop.f32.mrf.mxu1 }
 0x32d   :  { %v751_v33 = vpop.f32.mrf.mxu0 }
 0x32e   :  { %v724_v30 = vpop.f32.mrf.mxu3 }
 0x32f   :  { %860 = vrot.lane.b32.xlu0 %v724_v30, %s1286_s6 }
 0x337   :  { %862 = vrot.lane.b32.xlu0 %v751_v33, %s1286_s6 }
 0x33b   :  { %v777_v34 = vpop.f32.mrf.mxu1 }
 0x33c   :  { %868 = vrot.lane.b32.xlu2 %v777_v34, %s1287_s20 }
 0x341   :  { %v829_v35 = vpop.f32.mrf.mxu3  ;;  %v855_v38 = vpop.f32.mrf.mxu0 }
 0x342   :  { %876 = vrot.lane.b32.xlu1 %v829_v35, %s1288_s21  ;;  %v803_v37 = vpop.f32.mrf.mxu2  ;;  %v1084_v35 = vld [vmem:[%s1625_s9] ss:$0 sm:$0xff] }
 0x344   :  { %870 = vrot.lane.b32.xlu2 %v803_v37, %s1287_s20 }
 0x34a   :  { %878 = vrot.lane.b32.xlu1 %v855_v38, %s1288_s21 }
 0x396   :  { %v869_v52 = vpop.permute.xlu2 %868 }
 0x39e   :  { %v871_v58 = vpop.permute.xlu2 %870 }
 0x3a1   :  { %v861_v51 = vpop.permute.xlu0 %860 }
 0x3a2   :  { %v882_v53 = vsel %vm212_vm1, %v674_v31, %v861_v51  ;;  %v1083_v31 = vld [vmem:[%s1624_s8] ss:$0 sm:$0xff]  ;;  %s1291_s8 = smov [#allocation10]  }
 0x3a3   :  { %v884_v26 = vsel %vm112_vm0, %v882_v53, %v869_v52  ;;  %s996_s21 = sshll.u32 %s1291_s8, 4  ;;  %s997_s21 = int_to_ptr.vmem [resolvable:$true] %s996_s21 }
 0x3a9   :  { %v863_v56 = vpop.permute.xlu0 %862 }
 0x3aa   :  { %v883_v57 = vsel %vm212_vm1, %v697_v49, %v863_v56  ;;  %vm938_vm1 = vweird.f32 %v1118_v5 }
 0x3ab   :  { %v885_v60 = vsel %vm112_vm0, %v883_v57, %v871_v58  ;;  %v939_v8 = vsel %vm938_vm1, %v1118_v5, %v937_v46 }
 0x3b4   :  { %v877_v54 = vpop.permute.xlu1 %876 }
 0x3b5   :  { %v887_v55 = vsel %vm886_vm3, %v884_v26, %v877_v54 }
 0x3b6   :  { %1061 = vmatmul.msk.f32.vlgmr.msra.gmra.mxu1 %vm897_vm11, %v887_v55 }
 0x3bc   :  { %v879_v59 = vpop.permute.xlu1 %878 }
 0x3bd   :  { %v888_v61 = vsel %vm886_vm3, %v885_v60, %v879_v59 }
 0x3be   :  { %1062 = vmatmul.msk.f32.gmra.mxu1 %vm897_vm11, %v888_v61 }
 0x433   :  { %v921_v62 = vpop.f32.mrf.mxu1 }
 0x434   :  { %v922_v63 = vadd.f32 %v921_v62, %v1400_v9 }
 0x436   :  { %v927_v0 = vsel %vm112_vm0, %v922_v63, 0.0 }
 0x437   :  { %928 = vadd.xlane.f32.xlu0 %v927_v0 }
 0x43b   :  { %v924_v1 = vpop.f32.mrf.mxu1 }
 0x43c   :  { %v925_v2 = vadd.f32 %v924_v1, %v1405_v11 }
 0x43e   :  { %v930_v3 = vsel %vm112_vm0, %v925_v2, 0.0 }
 0x43f   :  { %931 = vadd.xlane.f32.xlu2 %v930_v3 }
 0x4aa   :  { %v929_v10 = vpop.xlane.xlu0 %928 }
 0x4ab   :  { %v940_v9 = vmul.f32 %v939_v8, %v929_v10 }
 0x4ad   :  { %v942_v13 = vsub.f32 %v922_v63, %v940_v9 }
 0x4af   :  { %v944_v12 = vmul.f32 %v942_v13, %v942_v13 }
 0x4b1   :  { %v946_v14 = vsel %vm112_vm0, %v944_v12, 0.0 }
 0x4b2   :  { %947 = vadd.xlane.f32.xlu1 %v946_v14  ;;  %v932_v11 = vpop.xlane.xlu2 %931 }
 0x4b3   :  { %v941_v15 = vmul.f32 %v939_v8, %v932_v11 }
 0x4b5   :  { %v943_v36 = vsub.f32 %v925_v2, %v941_v15 }
 0x4b7   :  { %v945_v17 = vmul.f32 %v943_v36, %v943_v36 }
 0x4b9   :  { %v949_v18 = vsel %vm112_vm0, %v945_v17, 0.0 }
 0x4ba   :  { %950 = vadd.xlane.f32.xlu0 %v949_v18 }
 0x525   :  { %v948_v19 = vpop.xlane.xlu1 %947 }
 0x526   :  { %v952_v20 = vmul.f32 %v948_v19, %v939_v8 }
 0x528   :  { %v954_v21 = vadd.f32 1e-05, %v952_v20 }
 0x52a   :  { %1119 = vrsqrt.f32 %v954_v21  ;;  %vm962_vm13 = vweird.f32 %v954_v21 }
 0x52d   :  { %v951_v22 = vpop.xlane.xlu0 %950 }
 0x52e   :  { %v953_v41 = vmul.f32 %v951_v22, %v939_v8 }
 0x530   :  { %v1120_v23 = vpop.eup %1119  ;;  %v955_v16 = vadd.f32 1e-05, %v953_v41 }
 0x531   :  { %v957_v24 = vmul.f32 %v1120_v23, %v954_v21  ;;  %vm963_vm12 = vweird.f32 %v1120_v23 }
 0x532   :  { %1121 = vrsqrt.f32 %v955_v16  ;;  %vm964_vm14 = vmor %vm962_vm13, %vm963_vm12  ;;  %vm972_vm2 = vweird.f32 %v955_v16 }
 0x533   :  { %v958_v25 = vmul.f32 %v1120_v23, %v957_v24 }
 0x535   :  { %v959_v27 = vmul.f32 0.5, %v958_v25 }
 0x537   :  { %v960_v28 = vsub.f32 1.5, %v959_v27 }
 0x538   :  { %v1122_v29 = vpop.eup %1121 }
 0x539   :  { %v961_v45 = vmul.f32 %v1120_v23, %v960_v28  ;;  %v967_v30 = vmul.f32 %v1122_v29, %v955_v16  ;;  %vm973_vm15 = vweird.f32 %v1122_v29 }
 0x53a   :  { %vm974_vm4 = vmor %vm972_vm2, %vm973_vm15 }
 0x53b   :  { %v965_v33 = vsel %vm964_vm14, %v1120_v23, %v961_v45  ;;  %v968_v49 = vmul.f32 %v1122_v29, %v967_v30 }
 0x53c   :  { %v976_v34 = vmul.f32 %v965_v33, %v942_v13 }
 0x53d   :  { %v969_v37 = vmul.f32 0.5, %v968_v49 }
 0x53e   :  { %v982_v38 = vmul.f32 %v1083_v31, %v976_v34 }
 0x53f   :  { %v970_v39 = vsub.f32 1.5, %v969_v37 }
 0x540   :  { %v988_v40 = vadd.f32 %v1084_v35, %v982_v38 }
 0x541   :  { %v971_v42 = vmul.f32 %v1122_v29, %v970_v39 }
 0x542   :  { %990 = vst.msk [vmem:[#allocation10] sm:$0xff] %vm112_vm0, %v988_v40 }
 0x543   :  { %v975_v43 = vsel %vm974_vm4, %v1122_v29, %v971_v42 }
 0x544   :  { %v977_v44 = vmul.f32 %v975_v43, %v943_v36 }
 0x546   :  { %v983_v47 = vmul.f32 %v1083_v31, %v977_v44 }
 0x548   :  { %v989_v48 = vadd.f32 %v1084_v35, %v983_v47 }
 0x54a   :  { %991 = vst.msk [vmem:[#allocation10 + $0x8] sm:$0xff] %vm112_vm0, %v989_v48 }
 0x54b   :  { %1004 = dma.vmem_to_hbm [thread:$0]  %s997_s21, 256, %s999_s24, [#allocation4], %s1278_s25, %s1278_s25, %s1279_s26  }
 0x54c   :  { %1273 = dma.done.wait [#allocation4], 256  }
 0x54d   :  { %1274 = vsyncadd [#allocation4], 4294967040 }
 0x54e   :  { %1275 = dma.done.wait [#allocation12], 1024  }
 0x54f   :  { %1276 = vsyncadd [#allocation12], 4294966272 }
 0x550   :  { %1026 = vsyncpa [#allocation3], 1 }
 0x551   :  { %1027 = vsyncpa [#allocation6], 1 }
 0x552   :  { %1028 = vsyncpa [#allocation9], 1 }
 0x553   :  { %1029 = vsyncpa [#allocation4], 1 }
 0x554   :  { %1030 = vsyncpa [#allocation12], 1 }

</bundles_post_ra>
